<compile_context>
chip_gen: v5e
topology: v5e:2x2
jax: 0.10.0
libtpu: 0.0.40
codegen_flags: <defaults>
</compile_context>

<pallas_src>
import functools

import jax
import jax.numpy as jnp
from jax.experimental import pallas as pl
from jax.experimental.pallas import tpu as pltpu


def _bf16_epilogue_supported():
    """bf16 VPU epilogue only on v6e / v7x (v5e and older have no bf16 VALU)."""
    try:
        kind = jax.devices()[0].device_kind.lower()
    except Exception:  # pragma: no cover - defensive; fall back to f32 epilogue
        return False
    return ("v6" in kind) or ("v7" in kind)


_BF16_EPILOGUE = _bf16_epilogue_supported()


def _mlp_kernel(x_ref, w1_ref, b1_ref, w2_ref, b2_ref, w3_ref, b3_ref, o_ref,
                *, bf16_epilogue):
    # x_ref: (5, TILE_B) bf16 tile of the transposed input (features on sublanes,
    # batch on lanes).  Weights: (out, in) bf16, pre-cast in the wrapper.
    x = x_ref[...]                                                       # (5, TB) bf16

    h1 = jnp.dot(w1_ref[...], x, preferred_element_type=jnp.float32)    # (100, TB) f32
    if bf16_epilogue:
        # v6e/v7x: bias+ReLU in bf16, fed straight into the next dot.
        h1 = jnp.maximum(h1.astype(jnp.bfloat16) + b1_ref[...], 0)
    else:
        # v5e: keep the epilogue in f32 (no bf16 VPU), then narrow for the MXU.
        h1 = jnp.maximum(h1 + b1_ref[...], 0.0).astype(jnp.bfloat16)

    h2 = jnp.dot(w2_ref[...], h1, preferred_element_type=jnp.float32)   # (50, TB) f32
    if bf16_epilogue:
        h2 = jnp.maximum(h2.astype(jnp.bfloat16) + b2_ref[...], 0)
    else:
        h2 = jnp.maximum(h2 + b2_ref[...], 0.0).astype(jnp.bfloat16)

    out = jnp.dot(w3_ref[...], h2, preferred_element_type=jnp.float32)  # (2, TB) f32
    o_ref[...] = out + b3_ref[...].astype(jnp.float32)


def _choose_tiling(batch, max_tile_b):
    """Lane-aligned padded batch, lane tile size, and grid length.

    For batches wider than one vreg we force an even number of >=2 grid steps so
    the "parallel" batch axis splits across both v7x TensorCores.
    """
    lanes = pl.cdiv(batch, 128) * 128
    if lanes <= 128:
        return lanes, lanes, 1
    n = max(2, pl.cdiv(lanes, max_tile_b))
    n += n % 2                                   # even step count (v7x megacore)
    tile_b = pl.cdiv(pl.cdiv(lanes, n), 128) * 128
    return n * tile_b, tile_b, n


@functools.partial(jax.jit, static_argnames=("max_tile_b",))
def mlp_forward(x, params, *, max_tile_b=4096):
    """x: (B, 5) f32.  params: PyTorch-layout weights (out,in) and biases (out,1)."""
    w1, b1, w2, b2, w3, b3 = params
    B, F_in = x.shape
    F_out = w3.shape[0]

    b_pad, tile_b, n_tiles = _choose_tiling(B, max_tile_b)

    # Feature-major / batch-on-lane layout, built directly in bf16 and zero-padded
    # along the batch (lane) dimension.  One fused op under jit.
    x_t = jnp.zeros((F_in, b_pad), jnp.bfloat16).at[:, :B].set(x.T.astype(jnp.bfloat16))

    # Pre-cast weights once per call (outside the grid loop); biases follow the
    # epilogue precision (bf16 on v6e/v7x, f32 on v5e).
    bias_dt = jnp.bfloat16 if _BF16_EPILOGUE else jnp.float32
    w1c, w2c, w3c = (w.astype(jnp.bfloat16) for w in (w1, w2, w3))
    b1c, b2c, b3c = (b.astype(bias_dt) for b in (b1, b2, b3))

    const = lambda a: pl.BlockSpec(a.shape, lambda i: (0, 0))   # VMEM-resident

    kernel = functools.partial(_mlp_kernel, bf16_epilogue=_BF16_EPILOGUE)

    # Working set at tile_b=4096 is ~5 MB (h1 f32 dominates) -> comfortably inside
    # default scoped VMEM on v5e/v6e/v7x; no vmem_limit_bytes override needed.
    out_t = pl.pallas_call(
        kernel,
        out_shape=jax.ShapeDtypeStruct((F_out, b_pad), jnp.float32),
        grid=(n_tiles,),
        in_specs=[
            pl.BlockSpec((F_in, tile_b), lambda i: (0, i)),     # x tile: batch-sliced
            const(w1c), const(b1c),                             # resident weights/bias
            const(w2c), const(b2c),
            const(w3c), const(b3c),
        ],
        out_specs=pl.BlockSpec((F_out, tile_b), lambda i: (0, i)),
        compiler_params=pltpu.CompilerParams(
            dimension_semantics=("parallel",),                  # megacore on v7x
        ),
    )(x_t, w1c, b1c, w2c, b2c, w3c, b3c)

    # Padded batch columns hold junk; always slice before use.
    return out_t[:, :B].T                                       # back to (B, 2) f32


def init_params(key):
    """Deterministic init mimicking PyTorch nn.Linear default U[-1/sqrt(in), 1/sqrt(in)].

    Weights in PyTorch layout (out, in); biases as (out, 1) so they broadcast along
    the lane (batch) dimension inside the kernel."""
    def linear(k, fan_in, fan_out):
        k_w, k_b = jax.random.split(k)
        bound = 1.0 / jnp.sqrt(jnp.float32(fan_in))
        w = jax.random.uniform(k_w, (fan_out, fan_in), jnp.float32, -bound, bound)
        b = jax.random.uniform(k_b, (fan_out, 1), jnp.float32, -bound, bound)
        return w, b

    k1, k2, k3 = jax.random.split(key, 3)
    w1, b1 = linear(k1, 5, 100)
    w2, b2 = linear(k2, 100, 50)
    w3, b3 = linear(k3, 50, 2)
    return (w1, b1, w2, b2, w3, b3)


def mlp_reference(x, params):
    """Plain-JAX f32 reference (matches the PyTorch module)."""
    w1, b1, w2, b2, w3, b3 = params
    h1 = jnp.maximum(x @ w1.T + b1.T, 0.0)
    h2 = jnp.maximum(h1 @ w2.T + b2.T, 0.0)
    return h2 @ w3.T + b3.T


if __name__ == "__main__":
    key = jax.random.PRNGKey(0)
    k_params, k_x = jax.random.split(key)

    params = init_params(k_params)
    x = jax.random.normal(k_x, (8, 5), jnp.float32)   # batch=8, 5 input features

    out = mlp_forward(x, params)
    out = jax.block_until_ready(out)

    ref = mlp_reference(x, params)
    assert out.shape == (8, 2)
    # bf16 matmul operands (+ bf16 epilogue on v6e/v7x) with f32 accumulation =>
    # loosen tolerance vs the pure-f32 reference.
    assert jnp.allclose(out, ref, atol=2e-2, rtol=2e-2), (out, ref)

    print("KERNEL_OK")
</pallas_src>

<mosaic_0001>
module attributes {stable_mosaic.version = 11 : i64} {
  func.func @_mlp_kernel(%arg0: i32, %arg1: memref<5x128xbf16, #tpu.memory_space<vmem>>, %arg2: memref<100x5xbf16, #tpu.memory_space<vmem>>, %arg3: memref<100x1xf32, #tpu.memory_space<vmem>>, %arg4: memref<50x100xbf16, #tpu.memory_space<vmem>>, %arg5: memref<50x1xf32, #tpu.memory_space<vmem>>, %arg6: memref<2x50xbf16, #tpu.memory_space<vmem>>, %arg7: memref<2x1xf32, #tpu.memory_space<vmem>>, %arg8: memref<2x128xf32, #tpu.memory_space<vmem>>) attributes {dimension_semantics = [#tpu.dimension_semantics<parallel>], iteration_bounds = array<i64: 1>, scalar_prefetch = 0 : i64, scratch_operands = 0 : i64, tpu.core_type = #tpu.core_type<tc>, window_params = [{transform_indices = @transform_0, window_bounds = array<i64: 5, 128>}, {pipeline_mode = #tpu.pipeline_mode<synchronous>, transform_indices = @transform_1, window_bounds = array<i64: 100, 5>}, {pipeline_mode = #tpu.pipeline_mode<synchronous>, transform_indices = @transform_2, window_bounds = array<i64: 100, 1>}, {pipeline_mode = #tpu.pipeline_mode<synchronous>, transform_indices = @transform_3, window_bounds = array<i64: 50, 100>}, {pipeline_mode = #tpu.pipeline_mode<synchronous>, transform_indices = @transform_4, window_bounds = array<i64: 50, 1>}, {pipeline_mode = #tpu.pipeline_mode<synchronous>, transform_indices = @transform_5, window_bounds = array<i64: 2, 50>}, {pipeline_mode = #tpu.pipeline_mode<synchronous>, transform_indices = @transform_6, window_bounds = array<i64: 2, 1>}, {transform_indices = @transform_7, window_bounds = array<i64: 2, 128>}]} {
    %c0 = arith.constant 0 : index
    %c0_0 = arith.constant 0 : index
    %0 = vector.load %arg1[%c0, %c0_0] : memref<5x128xbf16, #tpu.memory_space<vmem>>, vector<5x128xbf16>
    %c0_1 = arith.constant 0 : index
    %c0_2 = arith.constant 0 : index
    %1 = vector.load %arg2[%c0_1, %c0_2] : memref<100x5xbf16, #tpu.memory_space<vmem>>, vector<100x5xbf16>
    %cst = arith.constant dense<0.000000e+00> : vector<100x128xf32>
    %2 = tpu.matmul %1, %0, %cst {dimension_numbers = #tpu.dot_dimension_numbers<[1], [0], [0], [1], [0, 0, 1, 1], [], []>} : vector<100x5xbf16>, vector<5x128xbf16>, vector<100x128xf32> -> vector<100x128xf32>
    %c0_3 = arith.constant 0 : index
    %c0_4 = arith.constant 0 : index
    %3 = vector.load %arg3[%c0_3, %c0_4] : memref<100x1xf32, #tpu.memory_space<vmem>>, vector<100x1xf32>
    %4 = vector.broadcast %3 : vector<100x1xf32> to vector<100x128xf32>
    %5 = arith.addf %2, %4 : vector<100x128xf32>
    %cst_5 = arith.constant 0.000000e+00 : f32
    %6 = vector.broadcast %cst_5 : f32 to vector<100x128xf32>
    %7 = arith.maximumf %5, %6 : vector<100x128xf32>
    %8 = arith.truncf %7 : vector<100x128xf32> to vector<100x128xbf16>
    %c0_6 = arith.constant 0 : index
    %c0_7 = arith.constant 0 : index
    %9 = vector.load %arg4[%c0_6, %c0_7] : memref<50x100xbf16, #tpu.memory_space<vmem>>, vector<50x100xbf16>
    %cst_8 = arith.constant dense<0.000000e+00> : vector<50x128xf32>
    %10 = tpu.matmul %9, %8, %cst_8 {dimension_numbers = #tpu.dot_dimension_numbers<[1], [0], [0], [1], [0, 0, 1, 1], [], []>} : vector<50x100xbf16>, vector<100x128xbf16>, vector<50x128xf32> -> vector<50x128xf32>
    %c0_9 = arith.constant 0 : index
    %c0_10 = arith.constant 0 : index
    %11 = vector.load %arg5[%c0_9, %c0_10] : memref<50x1xf32, #tpu.memory_space<vmem>>, vector<50x1xf32>
    %12 = vector.broadcast %11 : vector<50x1xf32> to vector<50x128xf32>
    %13 = arith.addf %10, %12 : vector<50x128xf32>
    %cst_11 = arith.constant 0.000000e+00 : f32
    %14 = vector.broadcast %cst_11 : f32 to vector<50x128xf32>
    %15 = arith.maximumf %13, %14 : vector<50x128xf32>
    %16 = arith.truncf %15 : vector<50x128xf32> to vector<50x128xbf16>
    %c0_12 = arith.constant 0 : index
    %c0_13 = arith.constant 0 : index
    %17 = vector.load %arg6[%c0_12, %c0_13] : memref<2x50xbf16, #tpu.memory_space<vmem>>, vector<2x50xbf16>
    %cst_14 = arith.constant dense<0.000000e+00> : vector<2x128xf32>
    %18 = tpu.matmul %17, %16, %cst_14 {dimension_numbers = #tpu.dot_dimension_numbers<[1], [0], [0], [1], [0, 0, 1, 1], [], []>} : vector<2x50xbf16>, vector<50x128xbf16>, vector<2x128xf32> -> vector<2x128xf32>
    %c0_15 = arith.constant 0 : index
    %c0_16 = arith.constant 0 : index
    %19 = vector.load %arg7[%c0_15, %c0_16] : memref<2x1xf32, #tpu.memory_space<vmem>>, vector<2x1xf32>
    %20 = vector.broadcast %19 : vector<2x1xf32> to vector<2x128xf32>
    %21 = arith.addf %18, %20 : vector<2x128xf32>
    %c0_17 = arith.constant 0 : index
    %c0_18 = arith.constant 0 : index
    %22 = vector.load %arg8[%c0_17, %c0_18] : memref<2x128xf32, #tpu.memory_space<vmem>>, vector<2x128xf32>
    tpu.vector_store %arg8[%c0_17, %c0_18], %21 {strides = array<i32>} : memref<2x128xf32, #tpu.memory_space<vmem>>, vector<2x128xf32>,
    return
  }
  func.func @transform_0(%arg0: i32) -> (i32, i32) {
    %c0_i32 = arith.constant 0 : i32
    %c0_i32_0 = arith.constant 0 : i32
    return %c0_i32, %arg0 : i32, i32
  }
  func.func @transform_1(%arg0: i32) -> (i32, i32) {
    %c0_i32 = arith.constant 0 : i32
    %c0_i32_0 = arith.constant 0 : i32
    %c0_i32_1 = arith.constant 0 : i32
    return %c0_i32, %c0_i32_0 : i32, i32
  }
  func.func @transform_2(%arg0: i32) -> (i32, i32) {
    %c0_i32 = arith.constant 0 : i32
    %c0_i32_0 = arith.constant 0 : i32
    %c0_i32_1 = arith.constant 0 : i32
    return %c0_i32, %c0_i32_0 : i32, i32
  }
  func.func @transform_3(%arg0: i32) -> (i32, i32) {
    %c0_i32 = arith.constant 0 : i32
    %c0_i32_0 = arith.constant 0 : i32
    %c0_i32_1 = arith.constant 0 : i32
    return %c0_i32, %c0_i32_0 : i32, i32
  }
  func.func @transform_4(%arg0: i32) -> (i32, i32) {
    %c0_i32 = arith.constant 0 : i32
    %c0_i32_0 = arith.constant 0 : i32
    %c0_i32_1 = arith.constant 0 : i32
    return %c0_i32, %c0_i32_0 : i32, i32
  }
  func.func @transform_5(%arg0: i32) -> (i32, i32) {
    %c0_i32 = arith.constant 0 : i32
    %c0_i32_0 = arith.constant 0 : i32
    %c0_i32_1 = arith.constant 0 : i32
    return %c0_i32, %c0_i32_0 : i32, i32
  }
  func.func @transform_6(%arg0: i32) -> (i32, i32) {
    %c0_i32 = arith.constant 0 : i32
    %c0_i32_0 = arith.constant 0 : i32
    %c0_i32_1 = arith.constant 0 : i32
    return %c0_i32, %c0_i32_0 : i32, i32
  }
  func.func @transform_7(%arg0: i32) -> (i32, i32) {
    %c0_i32 = arith.constant 0 : i32
    %c0_i32_0 = arith.constant 0 : i32
    return %c0_i32, %arg0 : i32, i32
  }
}

</mosaic_0001>

<bundles_post_ra>
// kernel: mlp_forward.1
= control target key start
LH: loop header
LB: loop body
LE: loop exit
PB: predicated region body
PF: predicated region fallthrough
CT: control target
= control target key end

     0   :  { %vm174_vm0 = vcmask 1041408   ;;  %vm175_vm1 = vcmask 1042432   ;;  %v469_v0 = vmov 0   ;;  %v470_v3 = vmov 65535   ;;  %s628_s2 = inlined_call_operand.vmem [shape: f32[100,1], index: 2, kind: input, shape index: {}]   ;;  %s629_s0 = inlined_call_operand.vmem [shape: bf16[5,128], index: 0, kind: input, shape index: {}]   ;;  %s630_s1 = inlined_call_operand.vmem [shape: bf16[100,5], index: 1, kind: input, shape index: {}]   ;;  %s631_s4 = inlined_call_operand.vmem [shape: f32[50,1], index: 4, kind: input, shape index: {}]   ;;  %s632_s6 = inlined_call_operand.vmem [shape: f32[2,1], index: 6, kind: input, shape index: {}]   ;;  %s633_s3 = inlined_call_operand.vmem [shape: bf16[50,100], index: 3, kind: input, shape index: {}]   ;;  %s634_s5 = inlined_call_operand.vmem [shape: bf16[2,50], index: 5, kind: input, shape index: {}]   ;;  %s635_s7 = inlined_call_operand.vmem [shape: f32[2,128], index: 7, kind: output, shape index: {}]  }
   0x1   :  { %466 = vset.pattern.permute.xlu0 %v469_v0  ;;  %v53_v1 = vld [vmem:[%s628_s2 + $0x60] sm:$0xf]  ;;  %v176_v4 = vsel %vm174_vm0, 4294967295, %v470_v3  ;;  %467 = vset.pattern.permute.xlu1 %v469_v0  ;;  %v52_v6 = vld [vmem:[%s628_s2 + $0x58] sm:$0xff]  ;;  %v50_v8 = vld [vmem:[%s628_s2 + $0x48] sm:$0xff]  ;;  %vm152_vm2 = vcmask 39936  }
   0x2   :  { %v27_v2 = vld [vmem:[%s629_s0] sm:$0x7]  ;;  %116 = vperm.xlu0 %466, %v53_v1   ;;  %v177_v5 = vsel %vm175_vm1, %v176_v4, 0  ;;  %468 = vset.pattern.permute.xlu2 %v469_v0  ;;  %v51_v11 = vld [vmem:[%s628_s2 + $0x50] sm:$0xff]  ;;  %v48_v14 = vld [vmem:[%s628_s2 + $0x38] sm:$0xff]  ;;  %vm311_vm3 = vcmask 818176  }
   0x3   :  { %v179_v7 = vand.u32 %v177_v5, %v27_v2  ;;  %111 = vperm.xlu1 %467, %v52_v6   ;;  %v447_v9 = vld [vmem:[%s630_s1] sm:$0xff]  ;;  %101 = vperm.xlu2 %468, %v50_v8   ;;  %v47_v13 = vld [vmem:[%s628_s2 + $0x30] sm:$0xff]  ;;  %v46_v16 = vld [vmem:[%s628_s2 + $0x28] sm:$0xff]  ;;  %vm377_vm4 = vcmask 1040384   ;;  %vm373_vm5 = vcmask 408576  }
   0x4   :  { %v451_v10 = vld [vmem:[%s630_s1 + $0x20] sm:$0xff]  ;;  %v448_v17 = vld [vmem:[%s630_s1 + $0x8] sm:$0xff]  ;;  %v43_v19 = vld [vmem:[%s628_s2 + $0x10] sm:$0xff] }
   0x5   :  { %188 = vmatpush.bf16.msra.mxu0 %v179_v7  ;;  %456 = vmatpush.bf16.msra.mxu3 %v179_v7  ;;  %v49_v12 = vld [vmem:[%s628_s2 + $0x40] sm:$0xff]  ;;  %v452_v18 = vld [vmem:[%s630_s1 + $0x28] sm:$0xff]  ;;  %v44_v20 = vld [vmem:[%s628_s2 + $0x18] sm:$0xff] }
   0x6   :  { %v45_v15 = vld [vmem:[%s628_s2 + $0x20] sm:$0xff]  ;;  %v40_v22 = vld [vmem:[%s630_s1 + $0x30] sm:$0x3]  ;;  %v42_v23 = vld [vmem:[%s628_s2 + $0x8] sm:$0xff] }
   0x7   :  { %v41_v21 = vld [vmem:[%s628_s2] sm:$0xff]  ;;  %v144_v24 = vunpack.c.l.b16 %v40_v22  ;;  %v257_v25 = vld [vmem:[%s631_s4 + $0x30] sm:$0x3]  ;;  %v256_v29 = vld [vmem:[%s631_s4 + $0x28] sm:$0xff] }
   0x8   :  { %423 = vmatmul.msk.bf16.vlgmr.msra.gmra.mxu0 %vm152_vm2, %v447_v9  ;;  %427 = vmatmul.msk.bf16.vlgmr.msra.gmra.mxu3 %vm152_vm2, %v451_v10  ;;  %v255_v26 = vld [vmem:[%s631_s4 + $0x20] sm:$0xff]  ;;  %v449_v27 = vld [vmem:[%s630_s1 + $0x10] sm:$0xff]  ;;  %v254_v31 = vld [vmem:[%s631_s4 + $0x18] sm:$0xff] }
   0x9   :  { %v151_v28 = vpack.c.b16 %v144_v24, %v144_v24  ;;  %v253_v30 = vld [vmem:[%s631_s4 + $0x10] sm:$0xff]  ;;  %v251_v32 = vld [vmem:[%s631_s4] sm:$0xff]  ;;  %v252_v33 = vld [vmem:[%s631_s4 + $0x8] sm:$0xff] }
   0xa   :  { %106 = vperm.xlu0 %466, %v51_v11   ;;  %v367_v34 = vld [vmem:[%s632_s6] sm:$0x3]  ;;  %v450_v35 = vld [vmem:[%s630_s1 + $0x18] sm:$0xff] }
   0xb   :  { %96 = vperm.xlu1 %467, %v49_v12   ;;  %86 = vperm.xlu2 %468, %v47_v13  }
  0x12   :  { %91 = vperm.xlu0 %466, %v48_v14  }
  0x13   :  { %76 = vperm.xlu1 %467, %v45_v15   ;;  %81 = vperm.xlu2 %468, %v46_v16  }
  0x18   :  { %424 = vmatmul.msk.bf16.gmra.mxu0 %vm152_vm2, %v448_v17  ;;  %428 = vmatmul.msk.bf16.gmra.mxu3 %vm152_vm2, %v452_v18 }
  0x1a   :  { %66 = vperm.xlu0 %466, %v43_v19  }
  0x1b   :  { %71 = vperm.xlu1 %467, %v44_v20   ;;  %56 = vperm.xlu2 %468, %v41_v21  }
  0x22   :  { %61 = vperm.xlu0 %466, %v42_v23  }
  0x23   :  { %290 = vperm.xlu1 %467, %v257_v25   ;;  %280 = vperm.xlu2 %468, %v255_v26  }
  0x28   :  { %425 = vmatmul.msk.bf16.gmra.mxu0 %vm152_vm2, %v449_v27  ;;  %429 = vmatmul.msk.bf16.gmra.mxu3 %vm152_vm2, %v151_v28 }
  0x2a   :  { %285 = vperm.xlu0 %466, %v256_v29   ;;  %v250_v29 = vld [vmem:[%s633_s3 + $0x18] sm:$0x1] }
  0x2b   :  { %270 = vperm.xlu1 %467, %v253_v30   ;;  %275 = vperm.xlu2 %468, %v254_v31  }
  0x32   :  { %260 = vperm.xlu0 %466, %v251_v32   ;;  %v306_v32 = vunpack.c.l.b16 %v250_v29 }
  0x33   :  { %265 = vperm.xlu1 %467, %v252_v33   ;;  %370 = vperm.xlu2 %468, %v367_v34  }
  0x38   :  { %426 = vmatmul.msk.bf16.gmra.mxu0 %vm152_vm2, %v450_v35  ;;  %v453_v35 = vld [vmem:[%s633_s3] sm:$0xff] }
  0x5d   :  { %v102_v48 = vpop.permute.xlu2 %101 }
  0x65   :  { %v87_v58 = vpop.permute.xlu2 %86 }
  0x6d   :  { %v82_v8 = vpop.permute.xlu2 %81 }
  0x74   :  { %v117_v41 = vpop.permute.xlu0 %116 }
  0x75   :  { %v112_v44 = vpop.permute.xlu1 %111  ;;  %v57_v23 = vpop.permute.xlu2 %56 }
  0x7c   :  { %v107_v46 = vpop.permute.xlu0 %106 }
  0x7d   :  { %v97_v51 = vpop.permute.xlu1 %96 }
  0x84   :  { %v92_v55 = vpop.permute.xlu0 %91 }
  0x85   :  { %v606_v36 = vpop.f32.mrf.mxu0  ;;  %v77_v5 = vpop.permute.xlu1 %76 }
  0x86   :  { %v191_v27 = vadd.f32 %v606_v36, %v57_v23  ;;  %v454_v36 = vld [vmem:[%s633_s3 + $0x8] sm:$0xff] }
  0x88   :  { %v224_v33 = vmax.f32 %v191_v27, 0.0 }
  0x8b   :  { %v210_v37 = vpop.f32.mrf.mxu3 }
  0x8c   :  { %v211_v62 = vadd.f32 %v210_v37, %v97_v51  ;;  %v67_v6 = vpop.permute.xlu0 %66  ;;  %v310_v37 = vpack.c.b16 %v306_v32, %v306_v32 }
  0x8d   :  { %v192_v38 = vpop.f32.mrf.mxu0  ;;  %v72_v16 = vpop.permute.xlu1 %71 }
  0x8e   :  { %v232_v4 = vmax.f32 %v211_v62, 0.0 }
  0x93   :  { %v212_v39 = vpop.f32.mrf.mxu3 }
  0x94   :  { %v213_v59 = vadd.f32 %v212_v39, %v102_v48  ;;  %v62_v20 = vpop.permute.xlu0 %61 }
  0x95   :  { %v195_v40 = vpop.f32.mrf.mxu0  ;;  %v193_v24 = vadd.f32 %v192_v38, %v62_v20  ;;  %v455_v38 = vld [vmem:[%s633_s3 + $0x10] sm:$0xff] }
  0x96   :  { %v233_v1 = vmax.f32 %v213_v59, 0.0  ;;  %v196_v21 = vadd.f32 %v195_v40, %v67_v6  ;;  %v291_v40 = vpop.permute.xlu1 %290 }
  0x97   :  { %v225_v30 = vmax.f32 %v193_v24, 0.0 }
  0x98   :  { %v241_v7 = vpack.c.bf16 %v233_v1, %v232_v4  ;;  %v226_v28 = vmax.f32 %v196_v21, 0.0 }
  0x99   :  { %v237_v34 = vpack.c.bf16 %v225_v30, %v224_v33 }
  0x9b   :  { %v215_v42 = vpop.f32.mrf.mxu3 }
  0x9c   :  { %v216_v56 = vadd.f32 %v215_v42, %v107_v46 }
  0x9d   :  { %v197_v43 = vpop.f32.mrf.mxu0 }
  0x9e   :  { %v234_v63 = vmax.f32 %v216_v56, 0.0  ;;  %v198_v17 = vadd.f32 %v197_v43, %v72_v16 }
  0xa0   :  { %v227_v25 = vmax.f32 %v198_v17, 0.0 }
  0xa2   :  { %v238_v31 = vpack.c.bf16 %v227_v25, %v226_v28 }
  0xa3   :  { %v217_v45 = vpop.f32.mrf.mxu3 }
  0xa4   :  { %v218_v52 = vadd.f32 %v217_v45, %v112_v44 }
  0xa5   :  { %v200_v47 = vpop.f32.mrf.mxu0 }
  0xa6   :  { %v235_v60 = vmax.f32 %v218_v52, 0.0  ;;  %v201_v13 = vadd.f32 %v200_v47, %v77_v5  ;;  %v271_v52 = vpop.permute.xlu1 %270 }
  0xa8   :  { %v242_v3 = vpack.c.bf16 %v235_v60, %v234_v63  ;;  %v228_v22 = vmax.f32 %v201_v13, 0.0 }
  0xab   :  { %v220_v49 = vpop.f32.mrf.mxu3 }
  0xac   :  { %v221_v50 = vadd.f32 %v220_v49, %v117_v41 }
  0xad   :  { %v202_v53 = vpop.f32.mrf.mxu0 }
  0xae   :  { %v236_v54 = vmax.f32 %v221_v50, 0.0  ;;  %v203_v11 = vadd.f32 %v202_v53, %v82_v8  ;;  %v281_v50 = vpop.permute.xlu2 %280  ;;  %v286_v53 = vpop.permute.xlu0 %285 }
  0xaf   :  { %v266_v62 = vpop.permute.xlu1 %265 }
  0xb0   :  { %v243_v57 = vpack.c.bf16 %v236_v54, %v236_v54  ;;  %v229_v18 = vmax.f32 %v203_v11, 0.0 }
  0xb2   :  { %v325_v61 = vsel %vm174_vm0, %v243_v57, 0  ;;  %v239_v26 = vpack.c.bf16 %v229_v18, %v228_v22 }
  0xb3   :  { %v222_v0 = vpop.f32.mrf.mxu3  ;;  %328 = vmatpush.bf16.msra.mxu1 %v325_v61  ;;  %457 = vmatpush.bf16.msra.mxu2 %v325_v61 }
  0xb5   :  { %v205_v2 = vpop.f32.mrf.mxu0 }
  0xb6   :  { %v206_v9 = vadd.f32 %v205_v2, %v87_v58  ;;  %v261_v2 = vpop.permute.xlu0 %260 }
  0xb7   :  { %329 = vmatpush.bf16.msra.mxu1 %v242_v3  ;;  %458 = vmatpush.bf16.msra.mxu2 %v242_v3 }
  0xb8   :  { %v230_v14 = vmax.f32 %v206_v9, 0.0  ;;  %v366_v9 = vld [vmem:[%s634_s5] sm:$0x1] }
  0xbb   :  { %330 = vmatpush.bf16.msra.mxu1 %v241_v7  ;;  %459 = vmatpush.bf16.msra.mxu2 %v241_v7 }
  0xbd   :  { %v207_v10 = vpop.f32.mrf.mxu0 }
  0xbe   :  { %v208_v12 = vadd.f32 %v207_v10, %v92_v55  ;;  %v276_v55 = vpop.permute.xlu2 %275 }
  0xc0   :  { %v231_v15 = vmax.f32 %v208_v12, 0.0 }
  0xc2   :  { %v240_v19 = vpack.c.bf16 %v231_v15, %v230_v14 }
  0xc4   :  { %331 = vmatpush.bf16.msra.mxu1 %v240_v19  ;;  %460 = vmatpush.bf16.msra.mxu2 %v240_v19 }
  0xc6   :  { %v371_v10 = vpop.permute.xlu2 %370 }
  0xc8   :  { %332 = vmatpush.bf16.msra.mxu1 %v239_v26  ;;  %461 = vmatpush.bf16.msra.mxu2 %v239_v26 }
  0xcc   :  { %333 = vmatpush.bf16.msra.mxu1 %v238_v31  ;;  %462 = vmatpush.bf16.msra.mxu2 %v238_v31 }
  0xd0   :  { %334 = vmatpush.bf16.msra.mxu1 %v237_v34  ;;  %463 = vmatpush.bf16.msra.mxu2 %v237_v34 }
  0xd3   :  { %442 = vmatmul.msk.bf16.vlgmr.msra.gmra.mxu1 %vm311_vm3, %v453_v35  ;;  %445 = vmatmul.msk.bf16.vlgmr.msra.gmra.mxu2 %vm311_vm3, %v310_v37 }
  0xe3   :  { %443 = vmatmul.msk.bf16.gmra.mxu1 %vm311_vm3, %v454_v36 }
  0xf3   :  { %444 = vmatmul.msk.bf16.gmra.mxu1 %vm311_vm3, %v455_v38 }
 0x150   :  { %v336_v39 = vpop.f32.mrf.mxu1 }
 0x151   :  { %v337_v3 = vadd.f32 %v336_v39, %v261_v2 }
 0x153   :  { %v355_v7 = vmax.f32 %v337_v3, 0.0 }
 0x156   :  { %v351_v41 = vpop.f32.mrf.mxu2 }
 0x157   :  { %v352_v42 = vadd.f32 %v351_v41, %v291_v40 }
 0x158   :  { %v338_v43 = vpop.f32.mrf.mxu1 }
 0x159   :  { %v361_v44 = vmax.f32 %v352_v42, 0.0  ;;  %v339_v63 = vadd.f32 %v338_v43, %v266_v62 }
 0x15b   :  { %v365_v45 = vpack.c.bf16 %v361_v44, %v361_v44  ;;  %v356_v5 = vmax.f32 %v339_v63, 0.0 }
 0x15d   :  { %v379_v46 = vsel %vm377_vm4, %v365_v45, 0  ;;  %v362_v8 = vpack.c.bf16 %v356_v5, %v355_v7 }
 0x15e   :  { %385 = vmatpush.bf16.msrb.mxu2 %v379_v46  ;;  %v353_v47 = vpop.f32.mrf.mxu2 }
 0x160   :  { %v341_v48 = vpop.f32.mrf.mxu1 }
 0x161   :  { %v342_v59 = vadd.f32 %v341_v48, %v271_v52 }
 0x163   :  { %v357_v4 = vmax.f32 %v342_v59, 0.0 }
 0x168   :  { %v343_v49 = vpop.f32.mrf.mxu1 }
 0x169   :  { %v344_v57 = vadd.f32 %v343_v49, %v276_v55 }
 0x16b   :  { %v358_v0 = vmax.f32 %v344_v57, 0.0 }
 0x16d   :  { %v363_v6 = vpack.c.bf16 %v358_v0, %v357_v4 }
 0x170   :  { %v346_v51 = vpop.f32.mrf.mxu1 }
 0x171   :  { %v347_v54 = vadd.f32 %v346_v51, %v281_v50 }
 0x173   :  { %v359_v60 = vmax.f32 %v347_v54, 0.0 }
 0x178   :  { %v348_v56 = vpop.f32.mrf.mxu1 }
 0x179   :  { %v349_v58 = vadd.f32 %v348_v56, %v286_v53 }
 0x17b   :  { %v360_v61 = vmax.f32 %v349_v58, 0.0 }
 0x17d   :  { %v364_v1 = vpack.c.bf16 %v360_v61, %v359_v60 }
 0x17f   :  { %386 = vmatpush.bf16.msrb.mxu2 %v364_v1 }
 0x183   :  { %387 = vmatpush.bf16.msrb.mxu2 %v363_v6 }
 0x187   :  { %388 = vmatpush.bf16.msrb.mxu2 %v362_v8 }
 0x18a   :  { %446 = vmatmul.msk.bf16.vlgmr.msrb.gmra.mxu2 %vm373_vm5, %v366_v9 }
 0x20d   :  { %v390_v11 = vpop.f32.mrf.mxu2 }
 0x20e   :  { %v391_v12 = vadd.f32 %v390_v11, %v371_v10 }
 0x210   :  { %394 = vst [vmem:[%s635_s7] sm:$0x3] %v391_v12 }
 0x215   :  { %v392_v13 = vpop.f32.mrf.mxu2 }

</bundles_post_ra>
